<compile_context>
chip_gen: v6e
topology: v6e:2x2x1
jax: 0.10.0
libtpu: 0.0.40
codegen_flags: <defaults>
</compile_context>

<pallas_src>
import jax
import jax.numpy as jnp
from jax.experimental import pallas as pl
from jax.experimental.pallas import tpu as pltpu

BN_EPS = 1e-5


def _round_up(x, m):
    return (x + m - 1) // m * m


# ----------------------------------------------------------------------------
# Pallas kernel: fused (BN-folded) 3-layer MLP on one batch tile, feature-major.
# ----------------------------------------------------------------------------
def tabular_kernel(x_ref, w1_ref, b1_ref, w2_ref, b2_ref, w3_ref, b3_ref, out_ref):
    # x_ref: (128, TILE_B) bf16, features on sublanes, batch on lanes.
    x = x_ref[...]

    # Linear(n_in, 256) -> ReLU            h: (256, TILE_B) f32
    h = jnp.dot(w1_ref[...], x, preferred_element_type=jnp.float32) + b1_ref[...]
    h = jnp.maximum(h, 0.0)

    # Linear(256, 128) [bn1 folded] -> ReLU  h: (128, TILE_B) f32
    h = jnp.dot(w2_ref[...], h.astype(jnp.bfloat16),
                preferred_element_type=jnp.float32) + b2_ref[...]
    h = jnp.maximum(h, 0.0)

    # final Linear(128, out) [bn2 folded]; near-scalar (8, TILE_B) f32 output
    out_ref[...] = jnp.dot(w3_ref[...], h.astype(jnp.bfloat16),
                           preferred_element_type=jnp.float32) + b3_ref[...]


# ----------------------------------------------------------------------------
# Batch tiling: batch lives on the lane axis -> tiles are multiples of 128.
# ----------------------------------------------------------------------------
def _choose_batch_tiling(B, max_tile):
    b_ceil = _round_up(max(B, 1), 128)
    nb = max(1, pl.cdiv(b_ceil, max_tile))
    # Prefer an even number of grid steps so v7x's two TensorCores split the
    # "parallel" batch axis evenly (no-op on v5e/v6e); don't split tiny batches.
    if nb % 2 == 1 and b_ceil > 128:
        nb += 1
    tile_b = _round_up(pl.cdiv(b_ceil, nb), 128)
    return tile_b, nb * tile_b


# ----------------------------------------------------------------------------
# Wrapper: f32 bn_cont + one embedding gather + bf16 packing + pallas_call.
# ----------------------------------------------------------------------------
def tabular_forward(x_cat, x_cont, kp, *, max_tile_b=2048):
    B = x_cat.shape[0]
    n_in, out_sz = kp["n_in"], kp["out_sz"]
    N_IN_PAD = kp["w1t"].shape[1]     # 128
    OUT_SUB = kp["w3t"].shape[0]      # 8

    # bn_cont applied in f32 BEFORE the bf16 cast (precision of real features).
    xc = x_cont.astype(jnp.float32) * kp["bnc_scale"] + kp["bnc_bias"]
    # Single gather from the combined table (all tables indexed with column 1,
    # faithful to the reference).
    x_emb = kp["emb_combined"][x_cat[:, 1]]                          # (B, n_emb)
    x = jnp.concatenate([x_emb, xc], axis=1)                         # (B, n_in) f32

    tile_b, b_pad = _choose_batch_tiling(B, max_tile_b)
    nb = b_pad // tile_b

    # Feature-major, bf16, zero-padded packed input: (N_IN_PAD, b_pad).
    xt = jnp.pad(x.T.astype(jnp.bfloat16),
                 ((0, N_IN_PAD - n_in), (0, b_pad - B)))

    def resident(a):
        # Constant index_map -> stays VMEM-resident across grid steps.
        # (Could also be single-buffered via pipeline_mode; tiny either way.)
        return pl.BlockSpec(a.shape, lambda i: (0, 0))

    out = pl.pallas_call(
        tabular_kernel,
        out_shape=jax.ShapeDtypeStruct((OUT_SUB, b_pad), jnp.float32),
        grid=(nb,),
        in_specs=[
            pl.BlockSpec((N_IN_PAD, tile_b), lambda i: (0, i)),
            resident(kp["w1t"]), resident(kp["b1t"]),
            resident(kp["w2t"]), resident(kp["b2t"]),
            resident(kp["w3t"]), resident(kp["b3t"]),
        ],
        out_specs=pl.BlockSpec((OUT_SUB, tile_b), lambda i: (0, i)),
        compiler_params=pltpu.CompilerParams(
            dimension_semantics=("parallel",)),
    )(xt, kp["w1t"], kp["b1t"], kp["w2t"], kp["b2t"], kp["w3t"], kp["b3t"])

    return out[:out_sz, :B].T                                        # (B, out_sz)


# ----------------------------------------------------------------------------
# Parameters: raw (PyTorch-shaped) params, then a one-time fold/pad transform.
# ----------------------------------------------------------------------------
def make_params(key, emb_szs, n_cont, out_sz, layers):
    """Deterministic synthetic parameter init (shapes follow the PyTorch module)."""
    n_emb = sum(nf for _, nf in emb_szs)
    n_in = n_emb + n_cont
    ks = iter(jax.random.split(key, 64))
    p = {}

    p["emb_tables"] = [
        jax.random.normal(next(ks), (ni, nf), jnp.float32) * 0.1 for ni, nf in emb_szs
    ]

    def bn_params(n):
        g = 1.0 + 0.1 * jax.random.normal(next(ks), (1, n), jnp.float32)
        b = 0.1 * jax.random.normal(next(ks), (1, n), jnp.float32)
        m = 0.1 * jax.random.normal(next(ks), (1, n), jnp.float32)
        v = jnp.abs(jax.random.normal(next(ks), (1, n), jnp.float32)) + 0.5
        return g, b, m, v

    p["bnc_g"], p["bnc_b"], p["bnc_m"], p["bnc_v"] = bn_params(n_cont)

    def linear(n_i, n_o):
        bound = 1.0 / jnp.sqrt(jnp.float32(n_i))
        w = jax.random.uniform(next(ks), (n_i, n_o), jnp.float32, -bound, bound)
        b = jax.random.uniform(next(ks), (1, n_o), jnp.float32, -bound, bound)
        return w, b

    h1, h2 = layers
    p["w1"], p["b1"] = linear(n_in, h1)
    p["bn1_g"], p["bn1_b"], p["bn1_m"], p["bn1_v"] = bn_params(h1)
    p["w2"], p["b2"] = linear(h1, h2)
    p["bn2_g"], p["bn2_b"], p["bn2_m"], p["bn2_v"] = bn_params(h2)
    p["w3"], p["b3"] = linear(h2, out_sz)
    return p


def fold_params(p, emb_szs, n_cont, out_sz, layers):
    """Fold bn1/bn2 into Linears, transpose + pad for the feature-major kernel."""
    h1, h2 = layers
    n_emb = sum(nf for _, nf in emb_szs)
    n_in = n_emb + n_cont

    def bn_affine(g, b, m, v):
        s = g * jax.lax.rsqrt(v + BN_EPS)      # (1, n)
        return s, b - m * s

    # Combined embedding table: every table is gathered with x_cat[:, 1]; valid
    # only when those ids are < min(table rows) (checked on the host in main).
    min_rows = min(ni for ni, _ in emb_szs)
    emb_combined = jnp.concatenate(
        [tbl[:min_rows] for tbl in p["emb_tables"]], axis=1)        # (min_rows, n_emb)

    # bn_cont stays un-folded (applied in f32 in the wrapper).
    bnc_scale, bnc_bias = bn_affine(p["bnc_g"], p["bnc_b"], p["bnc_m"], p["bnc_v"])

    # bn1 -> w2/b2 ;  bn2 -> w3/b3
    s1, t1 = bn_affine(p["bn1_g"], p["bn1_b"], p["bn1_m"], p["bn1_v"])
    w2 = p["w2"] * s1.T
    b2 = p["b2"] + t1 @ p["w2"]
    s2, t2 = bn_affine(p["bn2_g"], p["bn2_b"], p["bn2_m"], p["bn2_v"])
    w3 = p["w3"] * s2.T
    b3 = p["b3"] + t2 @ p["w3"]

    N_IN_PAD = _round_up(n_in, 128)     # 128  (do NOT pad K further: HBM-bound)
    H1_PAD = _round_up(h1, 128)         # 256
    H2_PAD = _round_up(h2, 128)         # 128
    OUT_SUB = _round_up(out_sz, 8)      # 8   (near-scalar, batch-major output)

    def padT(a, rows, cols):
        at = a.T
        return jnp.pad(at, ((0, rows - at.shape[0]), (0, cols - at.shape[1])))

    return {
        "emb_combined": emb_combined.astype(jnp.float32),
        "bnc_scale": bnc_scale.astype(jnp.float32),
        "bnc_bias": bnc_bias.astype(jnp.float32),
        "w1t": padT(p["w1"], H1_PAD, N_IN_PAD).astype(jnp.bfloat16),
        "b1t": padT(p["b1"], H1_PAD, 1).astype(jnp.float32),
        "w2t": padT(w2, H2_PAD, H1_PAD).astype(jnp.bfloat16),
        "b2t": padT(b2, H2_PAD, 1).astype(jnp.float32),
        "w3t": padT(w3, OUT_SUB, H2_PAD).astype(jnp.bfloat16),
        "b3t": padT(b3, OUT_SUB, 1).astype(jnp.float32),
        "n_emb": n_emb, "n_in": n_in, "out_sz": out_sz,
    }


# ----------------------------------------------------------------------------
# References
# ----------------------------------------------------------------------------
def reference_forward(x_cat, x_cont, p):
    """Pure-JAX f32 reference of the PyTorch forward (eval mode)."""
    idx = x_cat[:, 1]
    x_emb = jnp.concatenate([tbl[idx] for tbl in p["emb_tables"]], axis=1)
    xc = (x_cont - p["bnc_m"]) * jax.lax.rsqrt(p["bnc_v"] + BN_EPS) * p["bnc_g"] + p["bnc_b"]
    x = jnp.concatenate([x_emb, xc], axis=1)
    h = jnp.maximum(x @ p["w1"] + p["b1"], 0.0)
    h = (h - p["bn1_m"]) * jax.lax.rsqrt(p["bn1_v"] + BN_EPS) * p["bn1_g"] + p["bn1_b"]
    h = jnp.maximum(h @ p["w2"] + p["b2"], 0.0)
    h = (h - p["bn2_m"]) * jax.lax.rsqrt(p["bn2_v"] + BN_EPS) * p["bn2_g"] + p["bn2_b"]
    return h @ p["w3"] + p["b3"]


def reference_forward_bf16(x_cat, x_cont, kp):
    """Mirror of the kernel numerics (bf16 weights/activations, f32 accumulate)."""
    n_in, out_sz = kp["n_in"], kp["out_sz"]
    xc = x_cont.astype(jnp.float32) * kp["bnc_scale"] + kp["bnc_bias"]
    x = jnp.concatenate([kp["emb_combined"][x_cat[:, 1]], xc], axis=1)
    xt = jnp.pad(x.T.astype(jnp.bfloat16), ((0, kp["w1t"].shape[1] - n_in), (0, 0)))
    h = jnp.maximum(jnp.dot(kp["w1t"], xt,
                            preferred_element_type=jnp.float32) + kp["b1t"], 0.0)
    h = jnp.maximum(jnp.dot(kp["w2t"], h.astype(jnp.bfloat16),
                            preferred_element_type=jnp.float32) + kp["b2t"], 0.0)
    o = jnp.dot(kp["w3t"], h.astype(jnp.bfloat16),
                preferred_element_type=jnp.float32) + kp["b3t"]
    return o[:out_sz].T


if __name__ == "__main__":
    # NYC taxi fares setup: cat_cols = ['Hour', 'AMorPM', 'Weekday']
    cat_szs = [24, 2, 7]
    emb_szs = [(s, min(50, (s + 1) // 2)) for s in cat_szs]   # [(24,12),(2,1),(7,4)]
    n_cont, out_sz, layers = 6, 1, [200, 100]
    B = 8

    key = jax.random.PRNGKey(0)
    k_par, k_cat, k_cont = jax.random.split(key, 3)

    params = make_params(k_par, emb_szs, n_cont, out_sz, layers)
    kparams = fold_params(params, emb_szs, n_cont, out_sz, layers)

    # x_cat: (B, 3) int32 with per-column valid category ids
    kc = jax.random.split(k_cat, len(cat_szs))
    x_cat = jnp.stack(
        [jax.random.randint(kc[i], (B,), 0, cat_szs[i], dtype=jnp.int32)
         for i in range(len(cat_szs))],
        axis=1,
    )
    # x_cont: (B, n_cont) float32
    x_cont = jax.random.normal(k_cont, (B, n_cont), jnp.float32)

    # The reference indexes EVERY embedding table with x_cat[:, 1]; that is only
    # well-defined when those ids are < the smallest table (PyTorch would raise,
    # JAX would clamp silently) -- check explicitly on the host.
    min_rows = min(ni for ni, _ in emb_szs)
    assert int(x_cat[:, 1].max()) < min_rows, "x_cat[:, 1] exceeds smallest embedding table"

    out = tabular_forward(x_cat, x_cont, kparams)
    jax.block_until_ready(out)
    assert out.shape == (B, out_sz)

    # Correctness: tight vs. a bf16-weight reference that mirrors kernel numerics,
    # looser vs. the fully-f32 reference (bf16 weight/activation quantization).
    ref_bf16 = reference_forward_bf16(x_cat, x_cont, kparams)
    ref_f32 = reference_forward(x_cat, x_cont, params)
    assert jnp.allclose(out, ref_bf16, atol=1e-2, rtol=1e-2), \
        f"max |err| vs bf16 ref = {float(jnp.max(jnp.abs(out - ref_bf16)))}"
    assert jnp.allclose(out, ref_f32, atol=5e-2, rtol=5e-2), \
        f"max |err| vs f32 ref = {float(jnp.max(jnp.abs(out - ref_f32)))}"

    # TODO(synk): training-mode Dropout / BatchNorm batch-stat updates are
    # stateful + stochastic and are intentionally modeled in eval mode only.
    print("KERNEL_OK")
</pallas_src>

<mosaic_0001>
module attributes {stable_mosaic.version = 11 : i64} {
  func.func @tabular_kernel(%arg0: i32, %arg1: memref<128x128xbf16, #tpu.memory_space<vmem>>, %arg2: memref<256x128xbf16, #tpu.memory_space<vmem>>, %arg3: memref<256x1xf32, #tpu.memory_space<vmem>>, %arg4: memref<128x256xbf16, #tpu.memory_space<vmem>>, %arg5: memref<128x1xf32, #tpu.memory_space<vmem>>, %arg6: memref<8x128xbf16, #tpu.memory_space<vmem>>, %arg7: memref<8x1xf32, #tpu.memory_space<vmem>>, %arg8: memref<8x128xf32, #tpu.memory_space<vmem>>) attributes {dimension_semantics = [#tpu.dimension_semantics<parallel>], iteration_bounds = array<i64: 1>, scalar_prefetch = 0 : i64, scratch_operands = 0 : i64, tpu.core_type = #tpu.core_type<tc>, window_params = [{transform_indices = @transform_0, window_bounds = array<i64: 128, 128>}, {pipeline_mode = #tpu.pipeline_mode<synchronous>, transform_indices = @transform_1, window_bounds = array<i64: 256, 128>}, {pipeline_mode = #tpu.pipeline_mode<synchronous>, transform_indices = @transform_2, window_bounds = array<i64: 256, 1>}, {pipeline_mode = #tpu.pipeline_mode<synchronous>, transform_indices = @transform_3, window_bounds = array<i64: 128, 256>}, {pipeline_mode = #tpu.pipeline_mode<synchronous>, transform_indices = @transform_4, window_bounds = array<i64: 128, 1>}, {pipeline_mode = #tpu.pipeline_mode<synchronous>, transform_indices = @transform_5, window_bounds = array<i64: 8, 128>}, {pipeline_mode = #tpu.pipeline_mode<synchronous>, transform_indices = @transform_6, window_bounds = array<i64: 8, 1>}, {transform_indices = @transform_7, window_bounds = array<i64: 8, 128>}]} {
    %c0 = arith.constant 0 : index
    %c0_0 = arith.constant 0 : index
    %0 = vector.load %arg1[%c0, %c0_0] : memref<128x128xbf16, #tpu.memory_space<vmem>>, vector<128x128xbf16>
    %c0_1 = arith.constant 0 : index
    %c0_2 = arith.constant 0 : index
    %1 = vector.load %arg2[%c0_1, %c0_2] : memref<256x128xbf16, #tpu.memory_space<vmem>>, vector<256x128xbf16>
    %cst = arith.constant dense<0.000000e+00> : vector<256x128xf32>
    %2 = tpu.matmul %1, %0, %cst {dimension_numbers = #tpu.dot_dimension_numbers<[1], [0], [0], [1], [0, 0, 1, 1], [], []>} : vector<256x128xbf16>, vector<128x128xbf16>, vector<256x128xf32> -> vector<256x128xf32>
    %c0_3 = arith.constant 0 : index
    %c0_4 = arith.constant 0 : index
    %3 = vector.load %arg3[%c0_3, %c0_4] : memref<256x1xf32, #tpu.memory_space<vmem>>, vector<256x1xf32>
    %4 = vector.broadcast %3 : vector<256x1xf32> to vector<256x128xf32>
    %5 = arith.addf %2, %4 : vector<256x128xf32>
    %cst_5 = arith.constant 0.000000e+00 : f32
    %6 = vector.broadcast %cst_5 : f32 to vector<256x128xf32>
    %7 = arith.maximumf %5, %6 : vector<256x128xf32>
    %c0_6 = arith.constant 0 : index
    %c0_7 = arith.constant 0 : index
    %8 = vector.load %arg4[%c0_6, %c0_7] : memref<128x256xbf16, #tpu.memory_space<vmem>>, vector<128x256xbf16>
    %9 = arith.truncf %7 : vector<256x128xf32> to vector<256x128xbf16>
    %cst_8 = arith.constant dense<0.000000e+00> : vector<128x128xf32>
    %10 = tpu.matmul %8, %9, %cst_8 {dimension_numbers = #tpu.dot_dimension_numbers<[1], [0], [0], [1], [0, 0, 1, 1], [], []>} : vector<128x256xbf16>, vector<256x128xbf16>, vector<128x128xf32> -> vector<128x128xf32>
    %c0_9 = arith.constant 0 : index
    %c0_10 = arith.constant 0 : index
    %11 = vector.load %arg5[%c0_9, %c0_10] : memref<128x1xf32, #tpu.memory_space<vmem>>, vector<128x1xf32>
    %12 = vector.broadcast %11 : vector<128x1xf32> to vector<128x128xf32>
    %13 = arith.addf %10, %12 : vector<128x128xf32>
    %cst_11 = arith.constant 0.000000e+00 : f32
    %14 = vector.broadcast %cst_11 : f32 to vector<128x128xf32>
    %15 = arith.maximumf %13, %14 : vector<128x128xf32>
    %c0_12 = arith.constant 0 : index
    %c0_13 = arith.constant 0 : index
    %16 = vector.load %arg6[%c0_12, %c0_13] : memref<8x128xbf16, #tpu.memory_space<vmem>>, vector<8x128xbf16>
    %17 = arith.truncf %15 : vector<128x128xf32> to vector<128x128xbf16>
    %cst_14 = arith.constant dense<0.000000e+00> : vector<8x128xf32>
    %18 = tpu.matmul %16, %17, %cst_14 {dimension_numbers = #tpu.dot_dimension_numbers<[1], [0], [0], [1], [0, 0, 1, 1], [], []>} : vector<8x128xbf16>, vector<128x128xbf16>, vector<8x128xf32> -> vector<8x128xf32>
    %c0_15 = arith.constant 0 : index
    %c0_16 = arith.constant 0 : index
    %19 = vector.load %arg7[%c0_15, %c0_16] : memref<8x1xf32, #tpu.memory_space<vmem>>, vector<8x1xf32>
    %20 = vector.broadcast %19 : vector<8x1xf32> to vector<8x128xf32>
    %21 = arith.addf %18, %20 : vector<8x128xf32>
    %c0_17 = arith.constant 0 : index
    %c0_18 = arith.constant 0 : index
    %22 = vector.load %arg8[%c0_17, %c0_18] : memref<8x128xf32, #tpu.memory_space<vmem>>, vector<8x128xf32>
    tpu.vector_store %arg8[%c0_17, %c0_18], %21 {strides = array<i32>} : memref<8x128xf32, #tpu.memory_space<vmem>>, vector<8x128xf32>,
    return
  }
  func.func @transform_0(%arg0: i32) -> (i32, i32) {
    %c0_i32 = arith.constant 0 : i32
    %c0_i32_0 = arith.constant 0 : i32
    return %c0_i32, %arg0 : i32, i32
  }
  func.func @transform_1(%arg0: i32) -> (i32, i32) {
    %c0_i32 = arith.constant 0 : i32
    %c0_i32_0 = arith.constant 0 : i32
    %c0_i32_1 = arith.constant 0 : i32
    return %c0_i32, %c0_i32_0 : i32, i32
  }
  func.func @transform_2(%arg0: i32) -> (i32, i32) {
    %c0_i32 = arith.constant 0 : i32
    %c0_i32_0 = arith.constant 0 : i32
    %c0_i32_1 = arith.constant 0 : i32
    return %c0_i32, %c0_i32_0 : i32, i32
  }
  func.func @transform_3(%arg0: i32) -> (i32, i32) {
    %c0_i32 = arith.constant 0 : i32
    %c0_i32_0 = arith.constant 0 : i32
    %c0_i32_1 = arith.constant 0 : i32
    return %c0_i32, %c0_i32_0 : i32, i32
  }
  func.func @transform_4(%arg0: i32) -> (i32, i32) {
    %c0_i32 = arith.constant 0 : i32
    %c0_i32_0 = arith.constant 0 : i32
    %c0_i32_1 = arith.constant 0 : i32
    return %c0_i32, %c0_i32_0 : i32, i32
  }
  func.func @transform_5(%arg0: i32) -> (i32, i32) {
    %c0_i32 = arith.constant 0 : i32
    %c0_i32_0 = arith.constant 0 : i32
    %c0_i32_1 = arith.constant 0 : i32
    return %c0_i32, %c0_i32_0 : i32, i32
  }
  func.func @transform_6(%arg0: i32) -> (i32, i32) {
    %c0_i32 = arith.constant 0 : i32
    %c0_i32_0 = arith.constant 0 : i32
    %c0_i32_1 = arith.constant 0 : i32
    return %c0_i32, %c0_i32_0 : i32, i32
  }
  func.func @transform_7(%arg0: i32) -> (i32, i32) {
    %c0_i32 = arith.constant 0 : i32
    %c0_i32_0 = arith.constant 0 : i32
    return %c0_i32, %arg0 : i32, i32
  }
}

</mosaic_0001>

<bundles_post_ra>
// kernel: tpu_custom_call.1
= control target key start
LH: loop header
LB: loop body
LE: loop exit
PB: predicated region body
PF: predicated region fallthrough
CT: control target
= control target key end

     0   :  { %v1277_v2 = vmov 0   ;;  %s1744_s0 = inlined_call_operand.vmem [shape: bf16[128,128], index: 0, kind: input, shape index: {}]   ;;  %s1745_s1 = inlined_call_operand.vmem [shape: bf16[256,128], index: 1, kind: input, shape index: {}]   ;;  %s1746_s2 = inlined_call_operand.vmem [shape: f32[256,1], index: 2, kind: input, shape index: {}]   ;;  %s1747_s3 = inlined_call_operand.vmem [shape: bf16[128,256], index: 3, kind: input, shape index: {}]   ;;  %s1748_s4 = inlined_call_operand.vmem [shape: f32[128,1], index: 4, kind: input, shape index: {}]   ;;  %s1749_s5 = inlined_call_operand.vmem [shape: bf16[8,128], index: 5, kind: input, shape index: {}]   ;;  %s1750_s6 = inlined_call_operand.vmem [shape: f32[8,1], index: 6, kind: input, shape index: {}]   ;;  %s1751_s7 = inlined_call_operand.hbm [shape: f32[8,128], index: 7, kind: output, shape index: {}]  }
   0x1   :  { %v1207_v0 = vld [vmem:[%s1744_s0 + $0x38] sm:$0xff]   ;;  %v1208_v1 = vld [vmem:[%s1744_s0 + $0x30] sm:$0xff]   ;;  %1205 = vset.pattern.permute.xlu0 %v1277_v2  ;;  %1206 = vset.pattern.permute.xlu1 %v1277_v2  ;;  %v1209_v3 = vld [vmem:[%s1744_s0 + $0x28] sm:$0xff]  }
   0x2   :  { %1133 = vmatprep.subr.bf16.mxu0 %v1207_v0  ;;  %v1210_v4 = vld [vmem:[%s1744_s0 + $0x20] sm:$0xff]   ;;  %v106_v6 = vld [vmem:[%s1746_s2 + $0xf0] sm:$0xff]  ;;  %v1211_v8 = vld [vmem:[%s1744_s0 + $0x18] sm:$0xff]  }
   0x3   :  { %1134 = vmatpush3.bf16.msra.mxu0 %v1207_v0  ;;  %v1215_v5 = vld [vmem:[%s1745_s1] sm:$0xff]   ;;  %v90_v7 = vld [vmem:[%s1746_s2 + $0x70] sm:$0xff]  ;;  %260 = vperm.xlu0 %1205, %v106_v6   ;;  %v107_v9 = vld [vmem:[%s1746_s2 + $0xf8] sm:$0xff] }
   0x4   :  { %1135 = vmatprep.subr.bf16.mxu0 %v1208_v1  ;;  %1149 = vmatprep.mubr.bf16.mxu0 %v1215_v5  ;;  %v91_v10 = vld [vmem:[%s1746_s2 + $0x78] sm:$0xff]  ;;  %v1212_v11 = vld [vmem:[%s1744_s0 + $0x10] sm:$0xff]   ;;  %v104_v12 = vld [vmem:[%s1746_s2 + $0xe0] sm:$0xff] }
   0x5   :  { %180 = vperm.xlu1 %1206, %v90_v7   ;;  %v105_v13 = vld [vmem:[%s1746_s2 + $0xe8] sm:$0xff]  ;;  %v88_v15 = vld [vmem:[%s1746_s2 + $0x60] sm:$0xff]  ;;  %v102_v18 = vld [vmem:[%s1746_s2 + $0xd0] sm:$0xff] }
   0x6   :  { %v1213_v14 = vld [vmem:[%s1744_s0 + $0x8] sm:$0xff]   ;;  %v1214_v17 = vld [vmem:[%s1744_s0] sm:$0xff]   ;;  %v103_v19 = vld [vmem:[%s1746_s2 + $0xd8] sm:$0xff] }
   0x7   :  { %1136 = vmatpush3.bf16.msra.mxu0 %v1208_v1  ;;  %265 = vperm.xlu0 %1205, %v107_v9   ;;  %v89_v16 = vld [vmem:[%s1746_s2 + $0x68] sm:$0xff]  ;;  %v86_v20 = vld [vmem:[%s1746_s2 + $0x50] sm:$0xff]  ;;  %v87_v21 = vld [vmem:[%s1746_s2 + $0x58] sm:$0xff] }
   0x8   :  { %1137 = vmatprep.subr.bf16.mxu0 %v1209_v3  ;;  %v1216_v22 = vld [vmem:[%s1745_s1 + $0x8] sm:$0xff]   ;;  %v1217_v23 = vld [vmem:[%s1745_s1 + $0x10] sm:$0xff]   ;;  %v100_v24 = vld [vmem:[%s1746_s2 + $0xc0] sm:$0xff] }
   0x9   :  { %185 = vperm.xlu1 %1206, %v91_v10   ;;  %v101_v25 = vld [vmem:[%s1746_s2 + $0xc8] sm:$0xff]  ;;  %v84_v26 = vld [vmem:[%s1746_s2 + $0x40] sm:$0xff]  ;;  %v1218_v28 = vld [vmem:[%s1745_s1 + $0x18] sm:$0xff]  }
   0xa   :  { %v85_v27 = vld [vmem:[%s1746_s2 + $0x48] sm:$0xff]  ;;  %v1219_v29 = vld [vmem:[%s1745_s1 + $0x20] sm:$0xff]   ;;  %v98_v30 = vld [vmem:[%s1746_s2 + $0xb0] sm:$0xff] }
   0xb   :  { %1138 = vmatpush3.bf16.msra.mxu0 %v1209_v3  ;;  %250 = vperm.xlu0 %1205, %v104_v12   ;;  %v99_v31 = vld [vmem:[%s1746_s2 + $0xb8] sm:$0xff]  ;;  %v82_v32 = vld [vmem:[%s1746_s2 + $0x30] sm:$0xff] }
   0xc   :  { %1139 = vmatprep.subr.bf16.mxu0 %v1210_v4  ;;  %v83_v33 = vld [vmem:[%s1746_s2 + $0x38] sm:$0xff] }
   0xd   :  { %255 = vperm.xlu1 %1206, %v105_v13  }
   0xf   :  { %1140 = vmatpush3.bf16.msra.mxu0 %v1210_v4  ;;  %170 = vperm.xlu0 %1205, %v88_v15  }
  0x10   :  { %1141 = vmatprep.subr.bf16.mxu0 %v1211_v8 }
  0x11   :  { %175 = vperm.xlu1 %1206, %v89_v16  }
  0x13   :  { %1142 = vmatpush3.bf16.msra.mxu0 %v1211_v8  ;;  %240 = vperm.xlu0 %1205, %v102_v18  }
  0x14   :  { %1143 = vmatprep.subr.bf16.mxu0 %v1212_v11 }
  0x15   :  { %245 = vperm.xlu1 %1206, %v103_v19  }
  0x17   :  { %1144 = vmatpush3.bf16.msra.mxu0 %v1212_v11  ;;  %160 = vperm.xlu0 %1205, %v86_v20  }
  0x18   :  { %1145 = vmatprep.subr.bf16.mxu0 %v1213_v14 }
  0x19   :  { %165 = vperm.xlu1 %1206, %v87_v21  }
  0x1b   :  { %1146 = vmatpush3.bf16.msra.mxu0 %v1213_v14  ;;  %230 = vperm.xlu0 %1205, %v100_v24  }
  0x1c   :  { %1147 = vmatprep.subr.bf16.mxu0 %v1214_v17 }
  0x1d   :  { %235 = vperm.xlu1 %1206, %v101_v25  }
  0x1f   :  { %1148 = vmatpush3.bf16.msra.mxu0 %v1214_v17  ;;  %150 = vperm.xlu0 %1205, %v84_v26  }
  0x21   :  { %155 = vperm.xlu1 %1206, %v85_v27  }
  0x22   :  { %1150 = vmatmul.mubr.bf16.vlgmr.msra.gmra.mxu0 %v1216_v22 }
  0x23   :  { %1153 = vmatprep.mubr.bf16.mxu0 %v1217_v23  ;;  %220 = vperm.xlu0 %1205, %v98_v30  }
  0x25   :  { %225 = vperm.xlu1 %1206, %v99_v31  }
  0x2a   :  { %1154 = vmatmul.mubr.bf16.gmra.mxu0 %v1218_v28 }
  0x2b   :  { %1157 = vmatprep.mubr.bf16.mxu0 %v1219_v29 }
  0x2c   :  { %12 = vsyncpa [#allocation3], 0  ;;  %v1220_v34 = vld [vmem:[%s1745_s1 + $0x28] sm:$0xff]   ;;  %v1221_v35 = vld [vmem:[%s1745_s1 + $0x30] sm:$0xff]   ;;  %140 = vperm.xlu0 %1205, %v82_v32   ;;  %145 = vperm.xlu1 %1206, %v83_v33   ;;  %vm1279_vm0 = vmmov 0   ;;  %s1280_s27 = smov [#allocation2]  }
  0x2d   :  { %v96_v36 = vld [vmem:[%s1746_s2 + $0xa0] sm:$0xff]  ;;  %v97_v37 = vld [vmem:[%s1746_s2 + $0xa8] sm:$0xff]  ;;  %v1222_v40 = vld [vmem:[%s1745_s1 + $0x38] sm:$0xff]   ;;  %s988_s28 = sshll.u32 %s1280_s27, 4  ;;  %s989_s28 = int_to_ptr.vmem [resolvable:$true] %s988_s28 }
  0x2e   :  { %v80_v38 = vld [vmem:[%s1746_s2 + $0x20] sm:$0xff]  ;;  %v81_v39 = vld [vmem:[%s1746_s2 + $0x28] sm:$0xff]  ;;  %v94_v42 = vld [vmem:[%s1746_s2 + $0x90] sm:$0xff]  ;;  %s1255_s29 = scalar_lea.vmem %s989_s28, 128  ;;  %p1260_p1 = scmp.lt.s32.totalorder %s989_s28, %s989_s28 }
  0x2f   :  { %v1223_v41 = vld [vmem:[%s1745_s1 + $0x40] sm:$0xff]   ;;  %v95_v43 = vld [vmem:[%s1746_s2 + $0x98] sm:$0xff]  ;;  %v78_v44 = vld [vmem:[%s1746_s2 + $0x10] sm:$0xff]  ;;  %p1256_p0 = scmp.ne.s32.totalorder %s989_s28, %s1255_s29  ;;  %p1261_p2 = scmp.lt.s32.totalorder %s1255_s29, %s1255_s29 }
  0x30   :  { %210 = vperm.xlu0 %1205, %v96_v36   ;;  %215 = vperm.xlu1 %1206, %v97_v37   ;;  %v79_v45 = vld [vmem:[%s1746_s2 + $0x18] sm:$0xff]  ;;  %v1224_v46 = vld [vmem:[%s1745_s1 + $0x48] sm:$0xff]   ;;  %v1225_v47 = vld [vmem:[%s1745_s1 + $0x50] sm:$0xff]  }
  0x31   :  { %v92_v48 = vld [vmem:[%s1746_s2 + $0x80] sm:$0xff]  ;;  %v93_v49 = vld [vmem:[%s1746_s2 + $0x88] sm:$0xff]  ;;  %v1226_v52 = vld [vmem:[%s1745_s1 + $0x58] sm:$0xff]   ;;  %p1262_p3 = por %p1261_p2, %p1260_p1 }
  0x32   :  { %1158 = vmatmul.mubr.bf16.gmra.mxu0 %v1220_v34  ;;  %v76_v50 = vld [vmem:[%s1746_s2] sm:$0xff]  ;;  %v77_v51 = vld [vmem:[%s1746_s2 + $0x8] sm:$0xff]  ;;  %v651_v54 = vld [vmem:[%s1748_s4 + $0x70] sm:$0xff] }
  0x33   :  { %1161 = vmatprep.mubr.bf16.mxu0 %v1221_v35  ;;  %v1227_v53 = vld [vmem:[%s1745_s1 + $0x60] sm:$0xff]   ;;  %v652_v55 = vld [vmem:[%s1748_s4 + $0x78] sm:$0xff]  ;;  %v650_v57 = vld [vmem:[%s1748_s4 + $0x68] sm:$0xff]  ;;  %p1263_p4 = pnand %p1262_p3, %p1256_p0 }
  0x34   :  { %130 = vperm.xlu0 %1205, %v80_v38   ;;  %135 = vperm.xlu1 %1206, %v81_v39   ;;  %v649_v56 = vld [vmem:[%s1748_s4 + $0x60] sm:$0xff]  ;;  %v1228_v58 = vld [vmem:[%s1745_s1 + $0x68] sm:$0xff]   ;;  %v1229_v59 = vld [vmem:[%s1745_s1 + $0x70] sm:$0xff]  }
  0x35   :  { %v647_v60 = vld [vmem:[%s1748_s4 + $0x50] sm:$0xff]  ;;  %v648_v61 = vld [vmem:[%s1748_s4 + $0x58] sm:$0xff]  ;;  %v645_v62 = vld [vmem:[%s1748_s4 + $0x40] sm:$0xff] }
  0x36   :  { %v646_v63 = vld [vmem:[%s1748_s4 + $0x48] sm:$0xff]  ;;  %v1230_v0 = vld [vmem:[%s1745_s1 + $0x78] sm:$0xff]   ;;  %v643_v1 = vld [vmem:[%s1748_s4 + $0x30] sm:$0xff] }
  0x37   :  { %v644_v2 = vld [vmem:[%s1748_s4 + $0x38] sm:$0xff]  ;;  %v641_v3 = vld [vmem:[%s1748_s4 + $0x20] sm:$0xff]  ;;  %v642_v4 = vld [vmem:[%s1748_s4 + $0x28] sm:$0xff] }
  0x38   :  { %200 = vperm.xlu0 %1205, %v94_v42   ;;  %205 = vperm.xlu1 %1206, %v95_v43   ;;  %v639_v5 = vld [vmem:[%s1748_s4 + $0x10] sm:$0xff]  ;;  %v640_v6 = vld [vmem:[%s1748_s4 + $0x18] sm:$0xff]  ;;  %v637_v7 = vld [vmem:[%s1748_s4] sm:$0xff] }
  0x39   :  { %v638_v8 = vld [vmem:[%s1748_s4 + $0x8] sm:$0xff]  ;;  %v935_v9 = vld [vmem:[%s1750_s6] sm:$0xff] }
  0x3a   :  { %1162 = vmatmul.mubr.bf16.gmra.mxu0 %v1222_v40  ;;  %v1233_v29 = vld [vmem:[%s1747_s3 + $0x4] ss:$8 sps:$4 sm:$0xff]  }
  0x3b   :  { %1165 = vmatprep.mubr.bf16.mxu0 %v1223_v41  ;;  %845 = vmatprep.mubr.bf16.mxu1 %v1233_v29 }
  0x3c   :  { %120 = vperm.xlu0 %1205, %v78_v44   ;;  %125 = vperm.xlu1 %1206, %v79_v45  }
  0x40   :  { %190 = vperm.xlu0 %1205, %v92_v48   ;;  %195 = vperm.xlu1 %1206, %v93_v49  }
  0x42   :  { %1166 = vmatmul.mubr.bf16.gmra.mxu0 %v1224_v46 }
  0x43   :  { %1169 = vmatprep.mubr.bf16.mxu0 %v1225_v47 }
  0x44   :  { %110 = vperm.xlu0 %1205, %v76_v50   ;;  %115 = vperm.xlu1 %1206, %v77_v51  }
  0x48   :  { %725 = vperm.xlu0 %1205, %v651_v54   ;;  %730 = vperm.xlu1 %1206, %v652_v55  }
  0x4a   :  { %1170 = vmatmul.mubr.bf16.gmra.mxu0 %v1226_v52 }
  0x4b   :  { %1173 = vmatprep.mubr.bf16.mxu0 %v1227_v53 }
  0x4c   :  { %715 = vperm.xlu0 %1205, %v649_v56   ;;  %720 = vperm.xlu1 %1206, %v650_v57  }
  0x50   :  { %705 = vperm.xlu0 %1205, %v647_v60   ;;  %710 = vperm.xlu1 %1206, %v648_v61  }
  0x52   :  { %1174 = vmatmul.mubr.bf16.gmra.mxu0 %v1228_v58 }
  0x53   :  { %1177 = vmatprep.mubr.bf16.mxu0 %v1229_v59 }
  0x54   :  { %695 = vperm.xlu0 %1205, %v645_v62   ;;  %700 = vperm.xlu1 %1206, %v646_v63  }
  0x58   :  { %685 = vperm.xlu0 %1205, %v643_v1   ;;  %690 = vperm.xlu1 %1206, %v644_v2  }
  0x5a   :  { %1178 = vmatmul.mubr.bf16.gmra.mxu0 %v1230_v0 }
  0x5c   :  { %675 = vperm.xlu0 %1205, %v641_v3   ;;  %680 = vperm.xlu1 %1206, %v642_v4  }
  0x60   :  { %665 = vperm.xlu0 %1205, %v639_v5   ;;  %670 = vperm.xlu1 %1206, %v640_v6  }
  0x64   :  { %655 = vperm.xlu0 %1205, %v637_v7   ;;  %660 = vperm.xlu1 %1206, %v638_v8  }
  0x68   :  { %938 = vperm.xlu0 %1205, %v935_v9  }
  0x7e   :  { %v1540_v10 = vpop.permute.xlu0 %260 }
  0x80   :  { %v1542_v11 = vpop.permute.xlu1 %180 }
  0x82   :  { %v1544_v12 = vpop.permute.xlu0 %265 }
  0x84   :  { %v1546_v13 = vpop.permute.xlu1 %185 }
  0x86   :  { %v1548_v14 = vpop.permute.xlu0 %250 }
  0x88   :  { %v1550_v15 = vpop.permute.xlu1 %255 }
  0x8a   :  { %v1552_v16 = vpop.permute.xlu0 %170 }
  0x8c   :  { %v1554_v17 = vpop.permute.xlu1 %175 }
  0x8e   :  { %v1556_v18 = vpop.permute.xlu0 %240 }
  0x90   :  { %v1558_v19 = vpop.permute.xlu1 %245 }
  0x92   :  { %v1560_v20 = vpop.permute.xlu0 %160 }
  0x94   :  { %v1562_v21 = vpop.permute.xlu1 %165 }
  0x96   :  { %v1564_v22 = vpop.permute.xlu0 %230 }
  0x98   :  { %v1566_v23 = vpop.permute.xlu1 %235 }
  0x9a   :  { %v1568_v24 = vpop.permute.xlu0 %150 }
  0x9c   :  { %v1570_v25 = vpop.permute.xlu1 %155 }
  0x9e   :  { %v1572_v26 = vpop.permute.xlu0 %220 }
  0xa0   :  { %v1574_v27 = vpop.permute.xlu1 %225 }
  0xa7   :  { %v141_v28 = vpop.permute.xlu0 %140  ;;  %v146_v30 = vpop.permute.xlu1 %145 }
  0xab   :  { %v1579_v31 = vpop.permute.xlu0 %210  ;;  %v1581_v32 = vpop.permute.xlu1 %215 }
  0xaf   :  { %v131_v33 = vpop.permute.xlu0 %130  ;;  %v136_v34 = vpop.permute.xlu1 %135 }
  0xb3   :  { %v1583_v35 = vpop.permute.xlu0 %200  ;;  %v1585_v36 = vpop.permute.xlu1 %205 }
  0xb7   :  { %v121_v37 = vpop.permute.xlu0 %120  ;;  %v126_v38 = vpop.permute.xlu1 %125 }
  0xbb   :  { %v1587_v39 = vpop.permute.xlu0 %190  ;;  %v1589_v40 = vpop.permute.xlu1 %195 }
  0xbf   :  { %v111_v44 = vpop.permute.xlu0 %110  ;;  %v116_v48 = vpop.permute.xlu1 %115 }
  0xe2   :  { %v1151_v41 = vpop.f32.mrf.mxu0 }
  0xe3   :  { %v455_v43 = vadd.f32 %v1151_v41, %v121_v37 }
  0xe4   :  { %v446_v42 = vpop.f32.mrf.mxu0 }
  0xe5   :  { %v447_v46 = vadd.f32 %v446_v42, %v111_v44  ;;  %v575_v50 = vmax.f32 %v455_v43, 0.0 }
  0xe6   :  { %v1152_v45 = vpop.f32.mrf.mxu0 }
  0xe7   :  { %v458_v47 = vadd.f32 %v1152_v45, %v126_v38  ;;  %v573_v54 = vmax.f32 %v447_v46, 0.0 }
  0xe8   :  { %v449_v49 = vpop.f32.mrf.mxu0 }
  0xe9   :  { %v576_v51 = vmax.f32 %v458_v47, 0.0  ;;  %v450_v52 = vadd.f32 %v449_v49, %v116_v48 }
  0xea   :  { %v1155_v53 = vpop.f32.mrf.mxu0 }
  0xeb   :  { %v1591_v55 = vpack.c.bf16 %v576_v51, %v575_v50  ;;  %v574_v56 = vmax.f32 %v450_v52, 0.0  ;;  %v471_v59 = vadd.f32 %v1155_v53, %v141_v28 }
  0xec   :  { %v462_v57 = vpop.f32.mrf.mxu0 }
  0xed   :  { %v1593_v58 = vpack.c.bf16 %v574_v56, %v573_v54  ;;  %v463_v61 = vadd.f32 %v462_v57, %v131_v33  ;;  %v579_v0 = vmax.f32 %v471_v59, 0.0 }
  0xee   :  { %v1156_v60 = vpop.f32.mrf.mxu0 }
  0xef   :  { %v474_v62 = vadd.f32 %v1156_v60, %v146_v30  ;;  %v577_v4 = vmax.f32 %v463_v61, 0.0 }
  0xf0   :  { %v465_v63 = vpop.f32.mrf.mxu0 }
  0xf1   :  { %v580_v1 = vmax.f32 %v474_v62, 0.0  ;;  %v466_v2 = vadd.f32 %v465_v63, %v136_v34 }
  0xf2   :  { %v1159_v3 = vpop.f32.mrf.mxu0 }
  0xf3   :  { %v1595_v5 = vpack.c.bf16 %v580_v1, %v579_v0  ;;  %v578_v6 = vmax.f32 %v466_v2, 0.0 }
  0xf4   :  { %v478_v7 = vpop.f32.mrf.mxu0 }
  0xf5   :  { %v1597_v8 = vpack.c.bf16 %v578_v6, %v577_v4 }
  0xf6   :  { %v1160_v9 = vpop.f32.mrf.mxu0 }
  0xf8   :  { %v481_v29 = vpop.f32.mrf.mxu0 }
  0xfa   :  { %v1163_v37 = vpop.f32.mrf.mxu0 }
  0xfb   :  { %v503_v56 = vadd.f32 %v1163_v37, %v1542_v11 }
  0xfc   :  { %v494_v38 = vpop.f32.mrf.mxu0 }
  0xfd   :  { %v587_v4 = vmax.f32 %v503_v56, 0.0 }
  0xfe   :  { %v1164_v28 = vpop.f32.mrf.mxu0 }
  0xff   :  { %v506_v52 = vadd.f32 %v1164_v28, %v1546_v13 }
 0x100   :  { %v497_v41 = vpop.f32.mrf.mxu0 }
 0x101   :  { %v588_v61 = vmax.f32 %v506_v52, 0.0  ;;  %v498_v62 = vadd.f32 %v497_v41, %v1554_v17 }
 0x102   :  { %v1599_v33 = vpop.f32.mrf.mxu0 }
 0x103   :  { %v586_v28 = vmax.f32 %v498_v62, 0.0  ;;  %v1246_v62 = vld [vmem:[%s1747_s3 + $0x54] ss:$8 sps:$4 sm:$0xff]  }
 0x104   :  { %v1601_v30 = vpop.f32.mrf.mxu0 }
 0x106   :  { %v1603_v42 = vpop.f32.mrf.mxu0 }
 0x108   :  { %v1605_v34 = vpop.f32.mrf.mxu0 }
 0x10a   :  { %v1171_v43 = vpop.f32.mrf.mxu0 }
 0x10c   :  { %v526_v44 = vpop.f32.mrf.mxu0 }
 0x10e   :  { %v1172_v45 = vpop.f32.mrf.mxu0 }
 0x110   :  { %v529_v46 = vpop.f32.mrf.mxu0 }
 0x112   :  { %v1175_v47 = vpop.f32.mrf.mxu0 }
 0x113   :  { %v551_v11 = vadd.f32 %v1175_v47, %v1556_v18 }
 0x114   :  { %v542_v48 = vpop.f32.mrf.mxu0 }
 0x115   :  { %v599_v52 = vmax.f32 %v551_v11, 0.0  ;;  %v1687_v11 = vpop.permute.xlu1 %730 }
 0x116   :  { %v1176_v49 = vpop.f32.mrf.mxu0 }
 0x117   :  { %v554_v0 = vadd.f32 %v1176_v49, %v1558_v19  ;;  %v487_v49 = vadd.f32 %v1159_v3, %v1560_v20  ;;  %v535_v20 = vadd.f32 %v1171_v43, %v1572_v26  ;;  %v519_v43 = vadd.f32 %v1599_v33, %v1583_v35  ;;  %v1242_v33 = vld [vmem:[%s1747_s3 + $0x30] ss:$8 sps:$4 sm:$0xff]  }
 0x118   :  { %v545_v50 = vpop.f32.mrf.mxu0 }
 0x119   :  { %v600_v17 = vmax.f32 %v554_v0, 0.0  ;;  %v546_v41 = vadd.f32 %v545_v50, %v1566_v23  ;;  %v479_v23 = vadd.f32 %v478_v7, %v1568_v24  ;;  %v522_v24 = vadd.f32 %v1603_v42, %v1585_v36  ;;  %v1249_v0 = vld [vmem:[%s1747_s3 + $0x64] ss:$8 sps:$4 sm:$0xff]  }
 0x11a   :  { %v1179_v51 = vpop.f32.mrf.mxu0 }
 0x11b   :  { %v567_v54 = vadd.f32 %v1179_v51, %v1540_v10  ;;  %v495_v10 = vadd.f32 %v494_v38, %v1552_v16  ;;  %v628_v51 = vpack.c.bf16 %v588_v61, %v587_v4  ;;  %v543_v16 = vadd.f32 %v542_v48, %v1564_v22 }
 0x11c   :  { %v558_v53 = vpop.f32.mrf.mxu0  ;;  %v482_v38 = vadd.f32 %v481_v29, %v1570_v25  ;;  %v530_v48 = vadd.f32 %v529_v46, %v1581_v32  ;;  %v581_v25 = vmax.f32 %v479_v23, 0.0  ;;  %v595_v29 = vmax.f32 %v535_v20, 0.0 }
 0x11d   :  { %v559_v59 = vadd.f32 %v558_v53, %v1548_v14  ;;  %v603_v1 = vmax.f32 %v567_v54, 0.0  ;;  %v598_v53 = vmax.f32 %v546_v41, 0.0  ;;  %v583_v54 = vmax.f32 %v487_v49, 0.0 }
 0x11e   :  { %v1180_v57 = vpop.f32.mrf.mxu0  ;;  %v597_v3 = vmax.f32 %v543_v16, 0.0  ;;  %v582_v56 = vmax.f32 %v482_v38, 0.0  ;;  %v594_v26 = vmax.f32 %v530_v48, 0.0  ;;  %v592_v32 = vmax.f32 %v522_v24, 0.0 }
 0x11f   :  { %v570_v60 = vadd.f32 %v1180_v57, %v1544_v12  ;;  %v601_v6 = vmax.f32 %v559_v59, 0.0  ;;  %v490_v12 = vadd.f32 %v1160_v9, %v1562_v21  ;;  %v538_v21 = vadd.f32 %v1172_v45, %v1574_v27 }
 0x120   :  { %v561_v63 = vpop.f32.mrf.mxu0  ;;  %v634_v9 = vpack.c.bf16 %v600_v17, %v599_v52  ;;  %v633_v57 = vpack.c.bf16 %v598_v53, %v597_v3  ;;  %v527_v27 = vadd.f32 %v526_v44, %v1579_v31  ;;  %v625_v45 = vpack.c.bf16 %v582_v56, %v581_v25 }
 0x121   :  { %v604_v2 = vmax.f32 %v570_v60, 0.0  ;;  %v562_v13 = vadd.f32 %v561_v63, %v1550_v15  ;;  %v585_v15 = vmax.f32 %v495_v10, 0.0  ;;  %v584_v18 = vmax.f32 %v490_v12, 0.0  ;;  %v1248_v63 = vld [vmem:[%s1747_s3 + $0x50] ss:$8 sps:$4 sm:$0xff]   ;;  %v1685_v10 = vpop.permute.xlu0 %725 }
 0x122   :  { %v596_v22 = vmax.f32 %v538_v21, 0.0  ;;  %v593_v59 = vmax.f32 %v527_v27, 0.0  ;;  %v514_v46 = vadd.f32 %v1605_v34, %v1589_v40  ;;  %v591_v31 = vmax.f32 %v519_v43, 0.0  ;;  %v1231_v40 = vld [vmem:[%s1747_s3] ss:$8 sps:$4 sm:$0xff]  }
 0x123   :  { %v602_v37 = vmax.f32 %v562_v13, 0.0  ;;  %v636_v14 = vpack.c.bf16 %v604_v2, %v603_v1  ;;  %v627_v47 = vpack.c.bf16 %v586_v28, %v585_v15  ;;  %v626_v50 = vpack.c.bf16 %v584_v18, %v583_v54  ;;  %v1245_v34 = vld [vmem:[%s1747_s3 + $0x40] ss:$8 sps:$4 sm:$0xff]   ;;  %v1252_v2 = vld [vmem:[%s1747_s3 + $0x74] ss:$8 sps:$4 sm:$0xff]  }
 0x124   :  { %v632_v7 = vpack.c.bf16 %v596_v22, %v595_v29  ;;  %v631_v60 = vpack.c.bf16 %v594_v26, %v593_v59  ;;  %v511_v44 = vadd.f32 %v1601_v30, %v1587_v39  ;;  %v630_v36 = vpack.c.bf16 %v592_v32, %v591_v31  ;;  %v1234_v39 = vld [vmem:[%s1747_s3 + $0x14] ss:$8 sps:$4 sm:$0xff]   ;;  %v1243_v30 = vld [vmem:[%s1747_s3 + $0x44] ss:$8 sps:$4 sm:$0xff]   ;;  %v1251_v1 = vld [vmem:[%s1747_s3 + $0x60] ss:$8 sps:$4 sm:$0xff]  }
 0x125   :  { %v635_v19 = vpack.c.bf16 %v602_v37, %v601_v6  ;;  %1060 = vmatprep.subr.bf16.mxu1 %v636_v14  ;;  %v590_v42 = vmax.f32 %v514_v46, 0.0  ;;  %v1254_v13 = vld [vmem:[%s1747_s3 + $0x70] ss:$8 sps:$4 sm:$0xff]   ;;  %v1278_v4 = vmov 0.0   ;;  %v1689_v6 = vpop.permute.xlu0 %715  ;;  %v1691_v37 = vpop.permute.xlu1 %720 }
 0x126   :  { %1061 = vmatpush3.bf16.msra.mxu1 %v628_v51  ;;  %v589_v61 = vmax.f32 %v511_v44, 0.0  ;;  %1181 = vmatprep.subr.bf16.mxu0 %v1278_v4 }
 0x127   :  { %1062 = vmatprep.subr.bf16.mxu1 %v635_v19  ;;  %1197 = vmatprep.mubr.msk.bf16.mxu0 %vm1279_vm0, %v1278_v4 }
 0x128   :  { %v629_v35 = vpack.c.bf16 %v590_v42, %v589_v61 }
 0x129   :  { %v1694_v14 = vpop.permute.xlu0 %705  ;;  %v1696_v12 = vpop.permute.xlu1 %710 }
 0x12a   :  { %1063 = vmatpush3.bf16.msra.mxu1 %v627_v47 }
 0x12b   :  { %1064 = vmatprep.subr.bf16.mxu1 %v634_v9 }
 0x12d   :  { %v1698_v28 = vpop.permute.xlu0 %695  ;;  %v1700_v51 = vpop.permute.xlu1 %700 }
 0x12e   :  { %1065 = vmatpush3.bf16.msra.mxu1 %v626_v50 }
 0x12f   :  { %1066 = vmatprep.subr.bf16.mxu1 %v633_v57 }
 0x131   :  { %v1702_v17 = vpop.permute.xlu0 %685  ;;  %v1704_v41 = vpop.permute.xlu1 %690 }
 0x132   :  { %1067 = vmatpush3.bf16.msra.mxu1 %v625_v45 }
 0x133   :  { %1068 = vmatprep.subr.bf16.mxu1 %v632_v7 }
 0x135   :  { %v1706_v19 = vpop.permute.xlu0 %675  ;;  %v1708_v49 = vpop.permute.xlu1 %680 }
 0x136   :  { %1069 = vmatpush3.bf16.msra.mxu1 %v1595_v5  ;;  %v1236_v5 = vld [vmem:[%s1747_s3 + $0x10] ss:$8 sps:$4 sm:$0xff]  }
 0x137   :  { %1070 = vmatprep.subr.bf16.mxu1 %v631_v60 }
 0x139   :  { %v666_v15 = vpop.permute.xlu0 %665  ;;  %v671_v16 = vpop.permute.xlu1 %670 }
 0x13a   :  { %1071 = vmatpush3.bf16.msra.mxu1 %v1597_v8  ;;  %v1240_v8 = vld [vmem:[%s1747_s3 + $0x34] ss:$8 sps:$4 sm:$0xff]  }
 0x13b   :  { %1072 = vmatprep.subr.bf16.mxu1 %v630_v36 }
 0x13d   :  { %v656_v21 = vpop.permute.xlu0 %655  ;;  %v661_v23 = vpop.permute.xlu1 %660 }
 0x13e   :  { %1073 = vmatpush3.bf16.msra.mxu1 %v1591_v55  ;;  %v1237_v55 = vld [vmem:[%s1747_s3 + $0x24] ss:$8 sps:$4 sm:$0xff]  }
 0x13f   :  { %1074 = vmatprep.subr.bf16.mxu1 %v629_v35 }
 0x142   :  { %1075 = vmatpush3.bf16.msra.mxu1 %v1593_v58  ;;  %v1239_v58 = vld [vmem:[%s1747_s3 + $0x20] ss:$8 sps:$4 sm:$0xff]  }
 0x145   :  { %846 = vmatmul.mubr.bf16.vlgmr.msra.gmra.mxu1 %v1231_v40 }
 0x146   :  { %853 = vmatprep.mubr.bf16.mxu1 %v1234_v39 }
 0x14d   :  { %854 = vmatmul.mubr.bf16.gmra.mxu1 %v1236_v5 }
 0x14e   :  { %861 = vmatprep.mubr.bf16.mxu1 %v1237_v55 }
 0x155   :  { %862 = vmatmul.mubr.bf16.gmra.mxu1 %v1239_v58 }
 0x156   :  { %869 = vmatprep.mubr.bf16.mxu1 %v1240_v8 }
 0x15d   :  { %870 = vmatmul.mubr.bf16.gmra.mxu1 %v1242_v33 }
 0x15e   :  { %877 = vmatprep.mubr.bf16.mxu1 %v1243_v30 }
 0x165   :  { %878 = vmatmul.mubr.bf16.gmra.mxu1 %v1245_v34 }
 0x166   :  { %885 = vmatprep.mubr.bf16.mxu1 %v1246_v62 }
 0x16d   :  { %886 = vmatmul.mubr.bf16.gmra.mxu1 %v1248_v63 }
 0x16e   :  { %893 = vmatprep.mubr.bf16.mxu1 %v1249_v0 }
 0x175   :  { %894 = vmatmul.mubr.bf16.gmra.mxu1 %v1251_v1 }
 0x176   :  { %901 = vmatprep.mubr.bf16.mxu1 %v1252_v2 }
 0x17d   :  { %902 = vmatmul.mubr.bf16.gmra.mxu1 %v1254_v13 }
 0x205   :  { %v1076_v52 = vpop.f32.mrf.mxu1 }
 0x207   :  { %v1077_v18 = vpop.f32.mrf.mxu1 }
 0x208   :  { %v1078_v38 = vadd.f32 %v1077_v18, %v1076_v52 }
 0x209   :  { %v1079_v47 = vpop.f32.mrf.mxu1 }
 0x20a   :  { %v848_v53 = vadd.f32 %v1078_v38, %v656_v21 }
 0x20b   :  { %v1080_v9 = vpop.f32.mrf.mxu1 }
 0x20c   :  { %v1081_v54 = vadd.f32 %v1080_v9, %v1079_v47  ;;  %v910_v56 = vmax.f32 %v848_v53, 0.0 }
 0x20d   :  { %v1082_v20 = vpop.f32.mrf.mxu1 }
 0x20e   :  { %v851_v3 = vadd.f32 %v1081_v54, %v661_v23 }
 0x20f   :  { %v1083_v50 = vpop.f32.mrf.mxu1 }
 0x210   :  { %v911_v22 = vmax.f32 %v851_v3, 0.0  ;;  %v1084_v48 = vadd.f32 %v1083_v50, %v1082_v20 }
 0x211   :  { %v1085_v57 = vpop.f32.mrf.mxu1 }
 0x212   :  { %v1710_v25 = vpack.c.bf16 %v911_v22, %v910_v56  ;;  %v856_v27 = vadd.f32 %v1084_v48, %v666_v15 }
 0x213   :  { %v1086_v29 = vpop.f32.mrf.mxu1 }
 0x214   :  { %v1087_v45 = vadd.f32 %v1086_v29, %v1085_v57  ;;  %v912_v43 = vmax.f32 %v856_v27, 0.0 }
 0x215   :  { %v1088_v24 = vpop.f32.mrf.mxu1 }
 0x216   :  { %v859_v7 = vadd.f32 %v1087_v45, %v671_v16 }
 0x217   :  { %v1089_v26 = vpop.f32.mrf.mxu1 }
 0x218   :  { %v913_v59 = vmax.f32 %v859_v7, 0.0  ;;  %v1712_v32 = vadd.f32 %v1089_v26, %v1088_v24 }
 0x219   :  { %v1091_v46 = vpop.f32.mrf.mxu1 }
 0x21a   :  { %v1714_v60 = vpack.c.bf16 %v913_v59, %v912_v43 }
 0x21b   :  { %v1092_v31 = vpop.f32.mrf.mxu1 }
 0x21d   :  { %v1094_v44 = vpop.f32.mrf.mxu1 }
 0x21f   :  { %v1095_v36 = vpop.f32.mrf.mxu1 }
 0x221   :  { %v1097_v42 = vpop.f32.mrf.mxu1 }
 0x223   :  { %v1098_v61 = vpop.f32.mrf.mxu1 }
 0x225   :  { %v1100_v35 = vpop.f32.mrf.mxu1 }
 0x227   :  { %v1101_v40 = vpop.f32.mrf.mxu1 }
 0x228   :  { %v1102_v48 = vadd.f32 %v1101_v40, %v1100_v35 }
 0x229   :  { %v1103_v39 = vpop.f32.mrf.mxu1 }
 0x22a   :  { %v880_v45 = vadd.f32 %v1102_v48, %v1698_v28  ;;  %v864_v28 = vadd.f32 %v1712_v32, %v1706_v19  ;;  %v926_v19 = vld [vmem:[%s1749_s5] sm:$0xf] }
 0x22b   :  { %v1104_v5 = vpop.f32.mrf.mxu1 }
 0x22c   :  { %v1105_v3 = vadd.f32 %v1104_v5, %v1103_v39  ;;  %v918_v59 = vmax.f32 %v880_v45, 0.0 }
 0x22d   :  { %v1106_v55 = vpop.f32.mrf.mxu1 }
 0x22f   :  { %v1107_v58 = vpop.f32.mrf.mxu1 }
 0x230   :  { %v1108_v53 = vadd.f32 %v1107_v58, %v1106_v55 }
 0x231   :  { %v1109_v8 = vpop.f32.mrf.mxu1 }
 0x232   :  { %v888_v57 = vadd.f32 %v1108_v53, %v1694_v14 }
 0x233   :  { %v1110_v33 = vpop.f32.mrf.mxu1 }
 0x234   :  { %v1111_v47 = vadd.f32 %v1110_v33, %v1109_v8  ;;  %v920_v24 = vmax.f32 %v888_v57, 0.0 }
 0x235   :  { %v1112_v30 = vpop.f32.mrf.mxu1 }
 0x236   :  { %v891_v50 = vadd.f32 %v1111_v47, %v1696_v12  ;;  %v1093_v12 = vadd.f32 %v1092_v31, %v1091_v46  ;;  %v914_v31 = vmax.f32 %v864_v28, 0.0 }
 0x237   :  { %v1113_v34 = vpop.f32.mrf.mxu1 }
 0x238   :  { %v1114_v16 = vadd.f32 %v1113_v34, %v1112_v30  ;;  %v921_v29 = vmax.f32 %v891_v50, 0.0 }
 0x239   :  { %v1115_v62 = vpop.f32.mrf.mxu1 }
 0x23a   :  { %v896_v54 = vadd.f32 %v1114_v16, %v1689_v6  ;;  %v1096_v6 = vadd.f32 %v1095_v36, %v1094_v44  ;;  %v932_v26 = vpack.c.bf16 %v921_v29, %v920_v24 }
 0x23b   :  { %v1116_v63 = vpop.f32.mrf.mxu1 }
 0x23c   :  { %v1117_v15 = vadd.f32 %v1116_v63, %v1115_v62  ;;  %v872_v43 = vadd.f32 %v1096_v6, %v1702_v17 }
 0x23d   :  { %v1118_v0 = vpop.f32.mrf.mxu1 }
 0x23e   :  { %v899_v21 = vadd.f32 %v1117_v15, %v1691_v37  ;;  %v1099_v37 = vadd.f32 %v1098_v61, %v1097_v42  ;;  %v916_v42 = vmax.f32 %v872_v43, 0.0 }
 0x23f   :  { %v1119_v1 = vpop.f32.mrf.mxu1 }
 0x240   :  { %v1120_v2 = vadd.f32 %v1119_v1, %v1118_v0  ;;  %v923_v56 = vmax.f32 %v899_v21, 0.0  ;;  %v875_v7 = vadd.f32 %v1099_v37, %v1704_v41 }
 0x241   :  { %v1121_v13 = vpop.f32.mrf.mxu1 }
 0x242   :  { %v904_v18 = vadd.f32 %v1120_v2, %v1685_v10  ;;  %v922_v10 = vmax.f32 %v896_v54, 0.0  ;;  %v917_v44 = vmax.f32 %v875_v7, 0.0 }
 0x243   :  { %v1122_v52 = vpop.f32.mrf.mxu1 }
 0x244   :  { %v1123_v38 = vadd.f32 %v1122_v52, %v1121_v13  ;;  %v924_v23 = vmax.f32 %v904_v18, 0.0  ;;  %v933_v27 = vpack.c.bf16 %v923_v56, %v922_v10  ;;  %v930_v46 = vpack.c.bf16 %v917_v44, %v916_v42 }
 0x246   :  { %v907_v9 = vadd.f32 %v1123_v38, %v1687_v11  ;;  %v883_v11 = vadd.f32 %v1105_v3, %v1700_v51  ;;  %v867_v51 = vadd.f32 %v1093_v12, %v1708_v49  ;;  %v939_v49 = vpop.permute.xlu0 %938 }
 0x248   :  { %v925_v20 = vmax.f32 %v907_v9, 0.0  ;;  %v919_v14 = vmax.f32 %v883_v11, 0.0  ;;  %v915_v41 = vmax.f32 %v867_v51, 0.0 }
 0x24a   :  { %v934_v22 = vpack.c.bf16 %v925_v20, %v924_v23  ;;  %v931_v36 = vpack.c.bf16 %v919_v14, %v918_v59  ;;  %v929_v17 = vpack.c.bf16 %v915_v41, %v914_v31 }
 0x24c   :  { %1182 = vmatpush3.bf16.msra.mxu0 %v934_v22 }
 0x24d   :  { %1183 = vmatprep.subr.bf16.mxu0 %v1278_v4 }
 0x250   :  { %1184 = vmatpush3.bf16.msra.mxu0 %v933_v27 }
 0x251   :  { %1185 = vmatprep.subr.bf16.mxu0 %v1278_v4 }
 0x254   :  { %1186 = vmatpush3.bf16.msra.mxu0 %v932_v26 }
 0x255   :  { %1187 = vmatprep.subr.bf16.mxu0 %v1278_v4 }
 0x258   :  { %1188 = vmatpush3.bf16.msra.mxu0 %v931_v36 }
 0x259   :  { %1189 = vmatprep.subr.bf16.mxu0 %v1278_v4 }
 0x25c   :  { %1190 = vmatpush3.bf16.msra.mxu0 %v930_v46 }
 0x25d   :  { %1191 = vmatprep.subr.bf16.mxu0 %v1278_v4 }
 0x260   :  { %1192 = vmatpush3.bf16.msra.mxu0 %v929_v17 }
 0x261   :  { %1193 = vmatprep.subr.bf16.mxu0 %v1278_v4 }
 0x264   :  { %1194 = vmatpush3.bf16.msra.mxu0 %v1714_v60 }
 0x265   :  { %1195 = vmatprep.subr.bf16.mxu0 %v1278_v4 }
 0x268   :  { %1196 = vmatpush3.bf16.msra.mxu0 %v1710_v25 }
 0x26b   :  { %1198 = vmatmul.mubr.bf16.vlgmr.msra.gmra.mxu0 %v926_v19 }
 0x32b   :  { %v975_v32 = vpop.f32.mrf.mxu0 }
 0x32c   :  { %v976_v61 = vadd.f32 %v975_v32, %v939_v49 }
 0x32d   :  { %v1199_v35 = vpop.f32.mrf.mxu0 }
 0x32e   :  { %981 = vst [vmem:[#allocation2] sm:$0xff] %v976_v61 }
 0x32f   :  { %v978_v40 = vpop.f32.mrf.mxu0 }
 0x330   :  { %1266 = shalt.err (!%p1263_p4)
}
 0x331   :  { %991 = dma.vmem_to_hbm [thread:$0]  %s989_s28, 128, %s1751_s7, [#allocation3]   ;;  %v1200_v4 = vpop.f32.mrf.mxu0 }
 0x332   :  { %1275 = dma.done.wait [#allocation3], 128  }
 0x333   :  { %1276 = vsyncadd [#allocation3], 4294967168 }
 0x334   :  { %995 = vsyncpa [#allocation3], 1 }

</bundles_post_ra>
